<compile_context>
chip_gen: v6e
topology: v6e:2x2x1
jax: 0.10.0
libtpu: 0.0.40
codegen_flags: <defaults>
</compile_context>

<pallas_src>
import functools

import numpy as np
import jax
import jax.numpy as jnp
from jax import lax
from jax.experimental import pallas as pl
from jax.experimental.pallas import tpu as pltpu

MAX_ATOM_TILE = 2048   # max atoms (contraction length) processed per grid step
MAX_MOL_TILE = 512     # max molecules (output lanes) per output tile


def _round_up(x: int, m: int) -> int:
    return -(-x // m) * m


def _segment_sum_kernel(idx_ref, prop_ref, out_ref, acc_ref, *, compute_dtype):
    """One-hot-matmul segment sum.

    idx_ref  : (ATOM_TILE, 1) int32   atom -> molecule index (-1 for padded atoms)
    prop_ref : (1, ATOM_TILE) float   per-atom property (0 for padded atoms)
    out_ref  : (1, MOL_TILE)  float   per-molecule reduced property (this M tile)
    acc_ref  : (8, MOL_TILE)  f32     accumulator scratch (rows identical)
    """
    a = pl.program_id(1)

    @pl.when(a == 0)
    def _():
        acc_ref[...] = jnp.zeros_like(acc_ref)

    atom_tile = idx_ref.shape[0]
    mol_tile = acc_ref.shape[1]
    m_off = pl.program_id(0) * mol_tile

    # Molecule ids covered by this output tile (tiny (1, MOL_TILE) iota).
    mol_ids = lax.broadcasted_iota(jnp.int32, (1, mol_tile), 1) + m_off
    # One-hot membership matrix: atoms along sublanes, molecules along lanes.
    onehot = (idx_ref[...] == mol_ids).astype(compute_dtype)       # (ATOM_TILE, MOL_TILE)

    # Broadcast the property row to 8 identical sublane rows so the MXU matmul
    # operands are sublane-aligned; redundant rows are free (MXU is nearly idle).
    prop = jnp.broadcast_to(prop_ref[...].astype(compute_dtype), (8, atom_tile))
    acc_ref[...] += jnp.dot(prop, onehot, preferred_element_type=jnp.float32)

    @pl.when(a == pl.num_programs(1) - 1)
    def _():
        out_ref[...] = acc_ref[0:1, :].astype(out_ref.dtype)


@functools.partial(jax.jit, static_argnums=(2,))
def _pallas_segment_sum(per_atom_property: jax.Array,
                        indices: jax.Array,
                        n_molecules: int) -> jax.Array:
    """Segment-sum of per_atom_property (n_atoms,) into (n_molecules,)."""
    n_atoms = per_atom_property.shape[0]
    dtype = per_atom_property.dtype

    # Adaptive tiling (multiples of 128 for the (8,128) layout constraint).
    if n_atoms <= MAX_ATOM_TILE:
        atom_tile = max(128, _round_up(n_atoms, 128))
        n_atoms_pad = atom_tile
    else:
        atom_tile = MAX_ATOM_TILE
        n_atoms_pad = _round_up(n_atoms, atom_tile)

    if n_molecules <= MAX_MOL_TILE:
        mol_tile = max(128, _round_up(n_molecules, 128))
        m_pad = mol_tile
    else:
        mol_tile = MAX_MOL_TILE
        m_pad = _round_up(n_molecules, mol_tile)

    pad_a = n_atoms_pad - n_atoms

    # Atom->molecule indices as a column (atoms along sublanes); padding -> -1.
    idx_col = jnp.pad(indices.astype(jnp.int32), (0, pad_a), constant_values=-1)[:, None]
    # Per-atom property as a row (atoms along lanes); padding -> 0.
    prop_row = jnp.pad(per_atom_property, (0, pad_a))[None, :]

    # bf16 inputs feed the MXU in bf16 (exact one-hot, f32 accumulation);
    # everything else computes in f32.
    compute_dtype = jnp.bfloat16 if dtype == jnp.bfloat16 else jnp.float32

    grid = (m_pad // mol_tile, n_atoms_pad // atom_tile)

    out = pl.pallas_call(
        functools.partial(_segment_sum_kernel, compute_dtype=compute_dtype),
        out_shape=jax.ShapeDtypeStruct((1, m_pad), dtype),
        grid_spec=pltpu.PrefetchScalarGridSpec(
            num_scalar_prefetch=0,
            grid=grid,
            in_specs=[
                pl.BlockSpec((atom_tile, 1), lambda m, a: (a, 0)),   # indices
                pl.BlockSpec((1, atom_tile), lambda m, a: (0, a)),   # property
            ],
            out_specs=pl.BlockSpec((1, mol_tile), lambda m, a: (0, m)),
            scratch_shapes=[pltpu.VMEM((8, mol_tile), jnp.float32)],
        ),
        compiler_params=pltpu.CompilerParams(
            dimension_semantics=("parallel", "arbitrary"),
        ),
    )(idx_col, prop_row)

    return out[0, :n_molecules]


class FromAtomToMoleculeReduction:
    """JAX/Pallas port of modelforge FromAtomToMoleculeReduction (reduction_mode='sum')."""

    def __init__(self,
                 per_atom_property_name: str,
                 index_name: str,
                 output_name: str,
                 reduction_mode: str = "sum",
                 keep_per_atom_property: bool = False,
                 num_molecules: int = None):
        if reduction_mode != "sum":
            # TODO(synk): 'mean'/'amax' scatter_reduce modes not implemented here.
            raise NotImplementedError("Only reduction_mode='sum' is implemented.")
        self.reduction_mode = reduction_mode
        self.per_atom_property_name = per_atom_property_name
        self.index_name = index_name
        self.output_name = output_name
        self.keep_per_atom_property = keep_per_atom_property
        # Optional static output size; avoids a host-side np.unique sync per call
        # (and makes the module jit-friendly).
        self.num_molecules = num_molecules

    def __call__(self, data):
        indices = data[self.index_name]
        per_atom_property = data[self.per_atom_property_name]
        if self.num_molecules is not None:
            n_molecules = int(self.num_molecules)
        else:
            # Matches torch `len(indices.unique())`; forces a device->host sync and
            # breaks tracing under jit — prefer passing num_molecules statically.
            n_molecules = int(len(np.unique(np.asarray(indices))))
        property_per_molecule = _pallas_segment_sum(
            per_atom_property, indices, n_molecules
        )
        data[self.output_name] = property_per_molecule
        if self.keep_per_atom_property is False:
            del data[self.per_atom_property_name]
        return data


if __name__ == "__main__":
    key = jax.random.PRNGKey(0)
    k1, k2, k3, k4 = jax.random.split(key, 4)

    # --- Test 1: small, sorted indices, via the module / dict interface ---------
    n_atoms = 16
    n_molecules = 4
    indices = jnp.sort(jax.random.randint(k1, (n_atoms,), 0, n_molecules, dtype=jnp.int32))
    # make sure every molecule id appears at least once
    indices = indices.at[:n_molecules].set(jnp.arange(n_molecules, dtype=jnp.int32))
    per_atom_energy = jax.random.normal(k2, (n_atoms,), dtype=jnp.float32)

    module = FromAtomToMoleculeReduction(
        per_atom_property_name="per_atom_energy",
        index_name="atomic_subsystem_indices",
        output_name="per_molecule_energy",
        reduction_mode="sum",
        keep_per_atom_property=False,
        num_molecules=n_molecules,   # static size: no host np.unique sync
    )

    data = {
        "per_atom_energy": per_atom_energy,
        "atomic_subsystem_indices": indices,
    }

    out = module(data)
    result = jax.block_until_ready(out["per_molecule_energy"])

    ref = jax.ops.segment_sum(per_atom_energy, indices, num_segments=n_molecules)
    np.testing.assert_allclose(np.asarray(result), np.asarray(ref), rtol=1e-6, atol=1e-6)
    assert "per_atom_energy" not in out  # keep_per_atom_property=False semantics

    # --- Test 2: larger, unsorted indices, direct kernel call -------------------
    n_atoms2 = 1000
    n_molecules2 = 7
    indices2 = jax.random.randint(k3, (n_atoms2,), 0, n_molecules2, dtype=jnp.int32)
    prop2 = jax.random.normal(k4, (n_atoms2,), dtype=jnp.float32)

    result2 = jax.block_until_ready(_pallas_segment_sum(prop2, indices2, n_molecules2))
    ref2 = jax.ops.segment_sum(prop2, indices2, num_segments=n_molecules2)
    np.testing.assert_allclose(np.asarray(result2), np.asarray(ref2), rtol=1e-5, atol=1e-5)

    print("KERNEL_OK")
</pallas_src>

<mosaic_0001>
module attributes {stable_mosaic.version = 11 : i64} {
  func.func @_segment_sum_kernel(%arg0: i32, %arg1: i32, %arg2: memref<128x1xi32, #tpu.memory_space<vmem>>, %arg3: memref<1x128xf32, #tpu.memory_space<vmem>>, %arg4: memref<1x128xf32, #tpu.memory_space<vmem>>, %arg5: memref<8x128xf32, #tpu.memory_space<vmem>>) attributes {dimension_semantics = [#tpu.dimension_semantics<parallel>, #tpu.dimension_semantics<arbitrary>], iteration_bounds = array<i64: 1, 1>, scalar_prefetch = 0 : i64, scratch_operands = 1 : i64, tpu.core_type = #tpu.core_type<tc>, window_params = [{transform_indices = @transform_0, window_bounds = array<i64: 128, 1>}, {transform_indices = @transform_1, window_bounds = array<i64: 1, 128>}, {transform_indices = @transform_2, window_bounds = array<i64: 1, 128>}]} {
    %c0_i32 = arith.constant 0 : i32
    %0 = arith.cmpi eq, %arg1, %c0_i32 : i32
    %1 = arith.extui %0 : i1 to i32
    %c0_i32_0 = arith.constant 0 : i32
    %2 = arith.cmpi ne, %1, %c0_i32_0 : i32
    scf.if %2 {
      %cst_10 = arith.constant 0.000000e+00 : f32
      %23 = vector.broadcast %cst_10 : f32 to vector<8x128xf32>
      %c0_11 = arith.constant 0 : index
      %c0_12 = arith.constant 0 : index
      %24 = vector.load %arg5[%c0_11, %c0_12] : memref<8x128xf32, #tpu.memory_space<vmem>>, vector<8x128xf32>
      tpu.vector_store %arg5[%c0_11, %c0_12], %23 {strides = array<i32>} : memref<8x128xf32, #tpu.memory_space<vmem>>, vector<8x128xf32>,
    } else {
    }
    %c128_i32 = arith.constant 128 : i32
    %3 = arith.muli %arg0, %c128_i32 : i32
    %4 = tpu.iota {dimensions = array<i32: 1>} : vector<1x128xi32>
    %5 = vector.broadcast %3 : i32 to vector<1x128xi32>
    %6 = arith.addi %4, %5 : vector<1x128xi32>
    %c0 = arith.constant 0 : index
    %c0_1 = arith.constant 0 : index
    %7 = vector.load %arg2[%c0, %c0_1] : memref<128x1xi32, #tpu.memory_space<vmem>>, vector<128x1xi32>
    %8 = vector.broadcast %7 : vector<128x1xi32> to vector<128x128xi32>
    %9 = vector.broadcast %6 : vector<1x128xi32> to vector<128x128xi32>
    %10 = arith.cmpi eq, %8, %9 : vector<128x128xi32>
    %11 = arith.extui %10 : vector<128x128xi1> to vector<128x128xi32>
    %12 = arith.sitofp %11 : vector<128x128xi32> to vector<128x128xf32>
    %c0_2 = arith.constant 0 : index
    %c0_3 = arith.constant 0 : index
    %13 = vector.load %arg3[%c0_2, %c0_3] : memref<1x128xf32, #tpu.memory_space<vmem>>, vector<1x128xf32>
    %14 = vector.shape_cast %13 : vector<1x128xf32> to vector<1x128xf32>
    %15 = vector.broadcast %14 : vector<1x128xf32> to vector<8x128xf32>
    %c0_4 = arith.constant 0 : index
    %c0_5 = arith.constant 0 : index
    %16 = vector.load %arg5[%c0_4, %c0_5] : memref<8x128xf32, #tpu.memory_space<vmem>>, vector<8x128xf32>
    %cst = arith.constant dense<0.000000e+00> : vector<8x128xf32>
    %17 = tpu.matmul %15, %12, %cst {dimension_numbers = #tpu.dot_dimension_numbers<[1], [0], [0], [1], [0, 0, 1, 1], [], []>} : vector<8x128xf32>, vector<128x128xf32>, vector<8x128xf32> -> vector<8x128xf32>
    %18 = arith.addf %16, %17 : vector<8x128xf32>
    %c0_6 = arith.constant 0 : index
    %c0_7 = arith.constant 0 : index
    %19 = vector.load %arg5[%c0_6, %c0_7] : memref<8x128xf32, #tpu.memory_space<vmem>>, vector<8x128xf32>
    tpu.vector_store %arg5[%c0_6, %c0_7], %18 {strides = array<i32>} : memref<8x128xf32, #tpu.memory_space<vmem>>, vector<8x128xf32>,
    %c0_i32_8 = arith.constant 0 : i32
    %20 = arith.cmpi eq, %arg1, %c0_i32_8 : i32
    %21 = arith.extui %20 : i1 to i32
    %c0_i32_9 = arith.constant 0 : i32
    %22 = arith.cmpi ne, %21, %c0_i32_9 : i32
    scf.if %22 {
      %c0_10 = arith.constant 0 : index
      %c0_11 = arith.constant 0 : index
      %23 = vector.load %arg5[%c0_10, %c0_11] : memref<8x128xf32, #tpu.memory_space<vmem>>, vector<1x128xf32>
      %c0_12 = arith.constant 0 : index
      %c0_13 = arith.constant 0 : index
      %24 = vector.load %arg4[%c0_12, %c0_13] : memref<1x128xf32, #tpu.memory_space<vmem>>, vector<1x128xf32>
      tpu.vector_store %arg4[%c0_12, %c0_13], %23 {strides = array<i32>} : memref<1x128xf32, #tpu.memory_space<vmem>>, vector<1x128xf32>,
    } else {
    }
    return
  }
  func.func @transform_0(%arg0: i32, %arg1: i32) -> (i32, i32) {
    %c0_i32 = arith.constant 0 : i32
    %c0_i32_0 = arith.constant 0 : i32
    return %arg1, %c0_i32 : i32, i32
  }
  func.func @transform_1(%arg0: i32, %arg1: i32) -> (i32, i32) {
    %c0_i32 = arith.constant 0 : i32
    %c0_i32_0 = arith.constant 0 : i32
    return %c0_i32, %arg1 : i32, i32
  }
  func.func @transform_2(%arg0: i32, %arg1: i32) -> (i32, i32) {
    %c0_i32 = arith.constant 0 : i32
    %c0_i32_0 = arith.constant 0 : i32
    return %c0_i32, %arg0 : i32, i32
  }
}

</mosaic_0001>

<bundles_post_ra>
// kernel: _pallas_segment_sum.1
= control target key start
LH: loop header
LB: loop body
LE: loop exit
PB: predicated region body
PF: predicated region fallthrough
CT: control target
= control target key end

     0   :  { %v313_v0 = vmov 0   ;;  %v314_v5 = vmov 0.0   ;;  %vm315_vm0 = vmmov 0   ;;  %v17_v18 = vlaneseq  ;;  %s421_s0 = inlined_call_operand.vmem [shape: s32[128,1], index: 0, kind: input, shape index: {}]   ;;  %s422_s1 = inlined_call_operand.vmem [shape: f32[1,128], index: 1, kind: input, shape index: {}]   ;;  %s423_s2 = inlined_call_operand.vmem [shape: f32[1,128], index: 2, kind: output, shape index: {}]  }
   0x1   :  { %312 = vset.pattern.permute.xlu1 %v313_v0  ;;  %311 = vset.pattern.permute.xlu0 %v313_v0  ;;  %v36_v1 = vld [vmem:[%s421_s0 + $0x78] sm:$0xff]  ;;  %v34_v2 = vld [vmem:[%s421_s0 + $0x68] sm:$0xff]  ;;  %v35_v3 = vld [vmem:[%s421_s0 + $0x70] sm:$0xff]  ;;  %v316_v22 = vmov 1.0  }
   0x2   :  { %83 = vperm.xlu0 %311, %v36_v1   ;;  %77 = vperm.xlu1 %312, %v34_v2   ;;  %v33_v4 = vld [vmem:[%s421_s0 + $0x60] sm:$0xff]  ;;  %v32_v6 = vld [vmem:[%s421_s0 + $0x58] sm:$0xff]  ;;  %v31_v7 = vld [vmem:[%s421_s0 + $0x50] sm:$0xff]  ;;  %v382_v19 = vand.u32 127, %v17_v18 }
   0x3   :  { %272 = vmatprep.subr.mxu0 %v314_v5  ;;  %v30_v8 = vld [vmem:[%s421_s0 + $0x48] sm:$0xff]  ;;  %v29_v9 = vld [vmem:[%s421_s0 + $0x40] sm:$0xff]  ;;  %v28_v10 = vld [vmem:[%s421_s0 + $0x38] sm:$0xff]  ;;  %304 = vmatprep.mubr.msk.f32.mxu0 %vm315_vm0, %v314_v5 }
   0x4   :  { %v27_v11 = vld [vmem:[%s421_s0 + $0x30] sm:$0xff]  ;;  %v26_v12 = vld [vmem:[%s421_s0 + $0x28] sm:$0xff]  ;;  %v25_v13 = vld [vmem:[%s421_s0 + $0x20] sm:$0xff] }
   0x5   :  { %v24_v14 = vld [vmem:[%s421_s0 + $0x18] sm:$0xff]  ;;  %v23_v15 = vld [vmem:[%s421_s0 + $0x10] sm:$0xff]  ;;  %v22_v16 = vld [vmem:[%s421_s0 + $0x8] sm:$0xff] }
   0x6   :  { %80 = vperm.xlu0 %311, %v35_v3   ;;  %74 = vperm.xlu1 %312, %v33_v4   ;;  %v21_v17 = vld [vmem:[%s421_s0] sm:$0xff] }
   0x7   :  { %v238_v37 = vld [vmem:[%s422_s1] ss:$0 sm:$0xff] }
   0xa   :  { %71 = vperm.xlu0 %311, %v32_v6   ;;  %68 = vperm.xlu1 %312, %v31_v7  }
   0xe   :  { %65 = vperm.xlu0 %311, %v30_v8   ;;  %62 = vperm.xlu1 %312, %v29_v9  }
  0x12   :  { %59 = vperm.xlu0 %311, %v28_v10   ;;  %56 = vperm.xlu1 %312, %v27_v11  }
  0x16   :  { %53 = vperm.xlu0 %311, %v26_v12   ;;  %50 = vperm.xlu1 %312, %v25_v13  }
  0x1a   :  { %47 = vperm.xlu0 %311, %v24_v14   ;;  %44 = vperm.xlu1 %312, %v23_v15  }
  0x1e   :  { %41 = vperm.xlu0 %311, %v22_v16   ;;  %38 = vperm.xlu1 %312, %v21_v17  }
  0x7d   :  { %v84_v20 = vpop.permute.xlu0 %83  ;;  %v78_v21 = vpop.permute.xlu1 %77 }
  0x7e   :  { %vm100_vm1 = vcmp.eq.s32.totalorder %v84_v20, %v382_v19  ;;  %vm98_vm3 = vcmp.eq.s32.totalorder %v78_v21, %v382_v19 }
  0x7f   :  { %273 = vmatpush3.msk.msra.mxu0 %vm100_vm1, %v316_v22 }
  0x80   :  { %274 = vmatprep.subr.mxu0 %v314_v5 }
  0x81   :  { %v81_v23 = vpop.permute.xlu0 %80  ;;  %v75_v24 = vpop.permute.xlu1 %74 }
  0x82   :  { %vm99_vm2 = vcmp.eq.s32.totalorder %v81_v23, %v382_v19  ;;  %vm97_vm4 = vcmp.eq.s32.totalorder %v75_v24, %v382_v19 }
  0x83   :  { %275 = vmatpush3.msk.msra.mxu0 %vm99_vm2, %v316_v22 }
  0x84   :  { %276 = vmatprep.subr.mxu0 %v314_v5 }
  0x85   :  { %277 = vmatpush3.msk.msra.mxu0 %vm98_vm3, %v316_v22  ;;  %v72_v25 = vpop.permute.xlu0 %71  ;;  %v69_v26 = vpop.permute.xlu1 %68 }
  0x86   :  { %278 = vmatprep.subr.mxu0 %v314_v5  ;;  %vm96_vm5 = vcmp.eq.s32.totalorder %v72_v25, %v382_v19  ;;  %vm95_vm6 = vcmp.eq.s32.totalorder %v69_v26, %v382_v19 }
  0x87   :  { %279 = vmatpush3.msk.msra.mxu0 %vm97_vm4, %v316_v22 }
  0x88   :  { %280 = vmatprep.subr.mxu0 %v314_v5 }
  0x89   :  { %281 = vmatpush3.msk.msra.mxu0 %vm96_vm5, %v316_v22  ;;  %v66_v27 = vpop.permute.xlu0 %65  ;;  %v63_v28 = vpop.permute.xlu1 %62 }
  0x8a   :  { %282 = vmatprep.subr.mxu0 %v314_v5  ;;  %vm94_vm7 = vcmp.eq.s32.totalorder %v66_v27, %v382_v19  ;;  %vm93_vm8 = vcmp.eq.s32.totalorder %v63_v28, %v382_v19 }
  0x8b   :  { %283 = vmatpush3.msk.msra.mxu0 %vm95_vm6, %v316_v22 }
  0x8c   :  { %284 = vmatprep.subr.mxu0 %v314_v5 }
  0x8d   :  { %285 = vmatpush3.msk.msra.mxu0 %vm94_vm7, %v316_v22  ;;  %v60_v29 = vpop.permute.xlu0 %59  ;;  %v57_v30 = vpop.permute.xlu1 %56 }
  0x8e   :  { %286 = vmatprep.subr.mxu0 %v314_v5  ;;  %vm92_vm9 = vcmp.eq.s32.totalorder %v60_v29, %v382_v19  ;;  %vm91_vm10 = vcmp.eq.s32.totalorder %v57_v30, %v382_v19 }
  0x8f   :  { %287 = vmatpush3.msk.msra.mxu0 %vm93_vm8, %v316_v22 }
  0x90   :  { %288 = vmatprep.subr.mxu0 %v314_v5 }
  0x91   :  { %289 = vmatpush3.msk.msra.mxu0 %vm92_vm9, %v316_v22  ;;  %v54_v31 = vpop.permute.xlu0 %53  ;;  %v51_v32 = vpop.permute.xlu1 %50 }
  0x92   :  { %290 = vmatprep.subr.mxu0 %v314_v5  ;;  %vm90_vm11 = vcmp.eq.s32.totalorder %v54_v31, %v382_v19  ;;  %vm89_vm12 = vcmp.eq.s32.totalorder %v51_v32, %v382_v19 }
  0x93   :  { %291 = vmatpush3.msk.msra.mxu0 %vm91_vm10, %v316_v22 }
  0x94   :  { %292 = vmatprep.subr.mxu0 %v314_v5 }
  0x95   :  { %293 = vmatpush3.msk.msra.mxu0 %vm90_vm11, %v316_v22  ;;  %v48_v33 = vpop.permute.xlu0 %47  ;;  %v45_v34 = vpop.permute.xlu1 %44 }
  0x96   :  { %294 = vmatprep.subr.mxu0 %v314_v5  ;;  %vm88_vm13 = vcmp.eq.s32.totalorder %v48_v33, %v382_v19  ;;  %vm87_vm14 = vcmp.eq.s32.totalorder %v45_v34, %v382_v19 }
  0x97   :  { %295 = vmatpush3.msk.msra.mxu0 %vm89_vm12, %v316_v22 }
  0x98   :  { %296 = vmatprep.subr.mxu0 %v314_v5 }
  0x99   :  { %297 = vmatpush3.msk.msra.mxu0 %vm88_vm13, %v316_v22  ;;  %v42_v35 = vpop.permute.xlu0 %41  ;;  %v39_v36 = vpop.permute.xlu1 %38 }
  0x9a   :  { %298 = vmatprep.subr.mxu0 %v314_v5  ;;  %vm86_vm15 = vcmp.eq.s32.totalorder %v42_v35, %v382_v19  ;;  %vm85_vm0 = vcmp.eq.s32.totalorder %v39_v36, %v382_v19 }
  0x9b   :  { %299 = vmatpush3.msk.msra.mxu0 %vm87_vm14, %v316_v22 }
  0x9c   :  { %300 = vmatprep.subr.mxu0 %v314_v5 }
  0x9d   :  { %301 = vmatpush3.msk.msra.mxu0 %vm86_vm15, %v316_v22 }
  0x9e   :  { %302 = vmatprep.subr.mxu0 %v314_v5 }
  0x9f   :  { %303 = vmatpush3.msk.msra.mxu0 %vm85_vm0, %v316_v22 }
  0xa0   :  { %305 = vmatmul.mubr.f32.vlgmr.msra.gmra.mxu0 %v238_v37 }
 0x160   :  { %v207_v38 = vpop.f32.mrf.mxu0 }
 0x161   :  { %212 = vst [vmem:[#allocation2] sm:$0xff] %v207_v38 }
 0x162   :  { %v306_v39 = vpop.f32.mrf.mxu0 }
 0x168   :  { %v216_v40 = vld [vmem:[#allocation2] sm:$0x1] }
 0x169   :  { %217 = vst [vmem:[%s423_s2] sm:$0x1] %v216_v40 }

</bundles_post_ra>
